<compile_context>
chip_gen: v7x
topology: tpu7x:2x2x1
jax: 0.10.0
libtpu: 0.0.40
codegen_flags: <defaults>
</compile_context>

<pallas_src>
import jax
import jax.numpy as jnp
from jax.experimental import pallas as pl
from jax.experimental.pallas import tpu as pltpu


def _mlp_kernel(x_ref, w1_ref, b1_ref, w2_ref, b2_ref, o_ref):
    # x_ref:  (Tm, R*D)      w1_ref: (R*D, R*H)   b1_ref: (1, R*H)
    # w2_ref: (R*H, R*O)     b2_ref: (1, R*O)     o_ref:  (Tm, R*O)
    x = x_ref[...].astype(w1_ref.dtype)           # in-kernel cast (VPU) -> no extra HBM pass
    h = jnp.dot(x, w1_ref[...], preferred_element_type=jnp.float32)
    h = jnp.maximum(h + b1_ref[...], 0.0)         # bias + ReLU in f32
    o = jnp.dot(h.astype(w2_ref.dtype), w2_ref[...], preferred_element_type=jnp.float32)
    o_ref[...] = (o + b2_ref[...]).astype(o_ref.dtype)


def _sublane_pack(dt):
    # rows per vreg sublane group: f32 -> 8, bf16 -> 16, int8/fp8 -> 32
    return max(8, 32 // jnp.dtype(dt).itemsize)


def _round_up(a, b):
    return pl.cdiv(a, b) * b


def simple_rebuild_fc_forward(rec_feature, w1, b1, w2, b2, step, freedom,
                              *, tm=8192, compute_dtype=None, out_dtype=None):
    """rec_feature: (B, N, input_dims) -> (B, N, step, freedom)."""
    B, N, D = rec_feature.shape
    H = w1.shape[1]
    O = w2.shape[1]
    assert O == step * freedom

    x_dtype = rec_feature.dtype
    out_dtype = jnp.dtype(x_dtype if out_dtype is None else out_dtype)

    M = B * N
    x2d = rec_feature.reshape(M, D)               # free row-major reshape

    # ---- choose the row-packing factor R (lane-dense output + wide-K matmuls) ----
    R = 1
    if O < 128 and 128 % O == 0:
        r = 128 // O
        # Guard on the *VMEM* cost of the resident block-diagonal weights (they
        # are DMA'd once, so their HBM cost is irrelevant).  4 MiB leaves ample
        # room for big x/out tiles even within v7x's 32 MiB scoped VMEM.
        blk_w_bytes = 4 * ((r * D) * (r * H) + (r * H) * (r * O))
        if blk_w_bytes <= 4 * 1024 * 1024:
            R = r

    if compute_dtype is None:
        # Block-diagonal packing inflates MXU FLOPs by R; bf16 MXU operands
        # (f32 accumulation) keep the kernel HBM-bound on v5e/v6e.
        compute_dtype = jnp.bfloat16 if R > 1 else x_dtype
    compute_dtype = jnp.dtype(compute_dtype)

    # ---- pad rows ONLY if M is not divisible by R (small copy; usually skipped) ----
    Mp = _round_up(M, R)
    if Mp != M:
        x2d = jnp.concatenate([x2d, jnp.zeros((Mp - M, D), x2d.dtype)], axis=0)

    # ---- build block-diagonal weights / tiled biases (tiny, one-time, wrapper-side) ----
    w1f = w1.astype(jnp.float32)
    w2f = w2.astype(jnp.float32)
    if R > 1:
        eyeR = jnp.eye(R, dtype=jnp.float32)
        # w_blk[i*D+d, j*H+h] = (i == j) * w[d, h]
        w1_p = (eyeR[:, None, :, None] * w1f[None, :, None, :]).reshape(R * D, R * H)
        w2_p = (eyeR[:, None, :, None] * w2f[None, :, None, :]).reshape(R * H, R * O)
        b1_p = jnp.tile(b1.astype(jnp.float32).reshape(1, H), (1, R))   # (1, R*H)
        b2_p = jnp.tile(b2.astype(jnp.float32).reshape(1, O), (1, R))   # (1, R*O)
    else:
        w1_p, w2_p = w1f, w2f
        b1_p = b1.astype(jnp.float32).reshape(1, H)
        b2_p = b2.astype(jnp.float32).reshape(1, O)
    w1_p = w1_p.astype(compute_dtype)
    w2_p = w2_p.astype(compute_dtype)

    RD, RH, RO = R * D, R * H, R * O
    x_p = x2d.reshape(Mp // R, RD)                # free reshape; dtype untouched (cast in-kernel)
    Mrows = Mp // R                               # packed row count

    # ---- tile geometry ----
    sub = max(_sublane_pack(x_p.dtype), _sublane_pack(out_dtype))
    Tm = max(((max(tm // R, sub)) // sub) * sub, sub)

    # VMEM working-set cap: double-buffered x/out tiles + f32 h intermediate
    # + double-buffered weights must stay well under the 32 MiB scoped default.
    x_b = jnp.dtype(x_p.dtype).itemsize
    o_b = jnp.dtype(out_dtype).itemsize
    w_bytes = 2 * (int(w1_p.size) * w1_p.dtype.itemsize
                   + int(w2_p.size) * w2_p.dtype.itemsize)
    per_row = 2 * RD * x_b + 2 * RO * o_b + 4 * RH
    budget = 24 * 1024 * 1024 - w_bytes
    max_rows = max(budget // per_row, sub)
    Tm = min(Tm, max((max_rows // sub) * sub, sub))

    # Never larger than the (sublane-rounded) amount of work.
    Tm = min(Tm, _round_up(Mrows, sub))

    # Keep >= 2 grid steps when there is enough work so both v7x TCs get a share.
    if Mrows >= 2 * sub:
        half = max((pl.cdiv(Mrows, 2) // sub) * sub, sub)
        Tm = min(Tm, half)

    grid_m = pl.cdiv(Mrows, Tm)   # last block may be ragged: OOB reads are garbage,
                                  # OOB writes are dropped; rows are independent.

    bytes_accessed = int(
        int(x_p.size) * x_p.dtype.itemsize
        + int(w1_p.size) * w1_p.dtype.itemsize
        + int(w2_p.size) * w2_p.dtype.itemsize
        + Mrows * RO * jnp.dtype(out_dtype).itemsize
    )

    out_p = pl.pallas_call(
        _mlp_kernel,
        out_shape=jax.ShapeDtypeStruct((Mrows, RO), out_dtype),
        grid_spec=pltpu.PrefetchScalarGridSpec(
            num_scalar_prefetch=0,
            grid=(grid_m,),
            in_specs=[
                pl.BlockSpec((Tm, RD), lambda i: (i, 0)),   # x tile (lane-dense when R>1)
                pl.BlockSpec((RD, RH), lambda i: (0, 0)),   # W1 (resident)
                pl.BlockSpec((1, RH), lambda i: (0, 0)),    # b1
                pl.BlockSpec((RH, RO), lambda i: (0, 0)),   # W2 (resident)
                pl.BlockSpec((1, RO), lambda i: (0, 0)),    # b2
            ],
            out_specs=pl.BlockSpec((Tm, RO), lambda i: (i, 0)),  # 128-lane-wide stores when R>1
        ),
        compiler_params=pltpu.CompilerParams(
            dimension_semantics=("parallel",),   # row axis shards across TCs (v7x megacore)
        ),
        cost_estimate=pl.CostEstimate(
            flops=int(2 * Mp * R * (D * H + H * O)),   # actual MXU work incl. R-fold packing
            transcendentals=0,
            bytes_accessed=bytes_accessed,
        ),
    )(x_p, w1_p, b1_p, w2_p, b2_p)

    out2d = out_p.reshape(Mp, O)                  # free unpack reshape
    if Mp != M:
        out2d = out2d[:M]                         # drop padded tail rows (only if padded)
    return out2d.reshape(B, N, step, freedom)


def _ref_forward(rec_feature, w1, b1, w2, b2, step, freedom):
    B = rec_feature.shape[0]
    x = rec_feature.astype(jnp.float32)
    h = jnp.maximum(x @ w1.astype(jnp.float32) + b1, 0.0)
    o = h @ w2.astype(jnp.float32) + b2
    return o.reshape(B, -1, step, freedom)


if __name__ == "__main__":
    # Small shapes consistent with the module's forward.
    batch, seq = 2, 8
    input_dims = 32
    hidden_dim = 64
    step, freedom = 8, 2
    out_dims = step * freedom

    key = jax.random.PRNGKey(0)
    kx, kw1, kb1, kw2, kb2 = jax.random.split(key, 5)

    rec_feature = jax.random.normal(kx, (batch, seq, input_dims), dtype=jnp.float32)
    # Deterministic synthetic parameters (Linear weights stored as (in, out)):
    w1 = jax.random.normal(kw1, (input_dims, hidden_dim), dtype=jnp.float32) * 0.05
    b1 = jax.random.normal(kb1, (hidden_dim,), dtype=jnp.float32) * 0.05
    w2 = jax.random.normal(kw2, (hidden_dim, out_dims), dtype=jnp.float32) * 0.05
    b2 = jax.random.normal(kb2, (out_dims,), dtype=jnp.float32) * 0.05

    expected = _ref_forward(rec_feature, w1, b1, w2, b2, step, freedom)

    # 1) Exact-math path: f32 MXU operands.
    out_f32 = simple_rebuild_fc_forward(rec_feature, w1, b1, w2, b2, step, freedom,
                                        compute_dtype=jnp.float32)
    out_f32 = jax.block_until_ready(out_f32)
    assert out_f32.shape == (batch, seq, step, freedom), out_f32.shape
    assert jnp.allclose(out_f32, expected, atol=1e-5, rtol=1e-5), "f32 mismatch vs reference"

    # 2) Default path: packed rows, bf16 MXU operands with f32 accumulation.
    out_def = simple_rebuild_fc_forward(rec_feature, w1, b1, w2, b2, step, freedom)
    out_def = jax.block_until_ready(out_def)
    assert out_def.shape == (batch, seq, step, freedom), out_def.shape
    assert jnp.allclose(out_def, expected, atol=5e-2, rtol=5e-2), "default(bf16) mismatch"

    # 3) Tail path: B*N not divisible by the packing factor (small pad branch).
    rec_tail = rec_feature[:, :5, :]
    exp_tail = _ref_forward(rec_tail, w1, b1, w2, b2, step, freedom)
    out_tail = simple_rebuild_fc_forward(rec_tail, w1, b1, w2, b2, step, freedom,
                                         compute_dtype=jnp.float32)
    out_tail = jax.block_until_ready(out_tail)
    assert out_tail.shape == (batch, 5, step, freedom), out_tail.shape
    assert jnp.allclose(out_tail, exp_tail, atol=1e-5, rtol=1e-5), "tail mismatch vs reference"

    # 4) bf16 output writeback (halves output HBM traffic on the bf16 path).
    out_bf = simple_rebuild_fc_forward(rec_feature, w1, b1, w2, b2, step, freedom,
                                       out_dtype=jnp.bfloat16)
    out_bf = jax.block_until_ready(out_bf)
    assert out_bf.dtype == jnp.bfloat16
    assert out_bf.shape == (batch, seq, step, freedom), out_bf.shape
    assert jnp.allclose(out_bf.astype(jnp.float32), expected, atol=5e-2, rtol=5e-2), \
        "bf16-out mismatch vs reference"

    print("KERNEL_OK")
</pallas_src>

<mosaic_0001>
module attributes {stable_mosaic.version = 11 : i64} {
  func.func @_mlp_kernel(%arg0: i32, %arg1: memref<8x256xf32, #tpu.memory_space<vmem>>, %arg2: memref<256x512xf32, #tpu.memory_space<vmem>>, %arg3: memref<1x512xf32, #tpu.memory_space<vmem>>, %arg4: memref<512x128xf32, #tpu.memory_space<vmem>>, %arg5: memref<1x128xf32, #tpu.memory_space<vmem>>, %arg6: memref<8x128xf32, #tpu.memory_space<vmem>>) attributes {dimension_semantics = [#tpu.dimension_semantics<parallel>], iteration_bounds = array<i64: 1>, scalar_prefetch = 0 : i64, scratch_operands = 0 : i64, tpu.core_type = #tpu.core_type<tc>, window_params = [{transform_indices = @transform_0, window_bounds = array<i64: 8, 256>}, {pipeline_mode = #tpu.pipeline_mode<synchronous>, transform_indices = @transform_1, window_bounds = array<i64: 256, 512>}, {pipeline_mode = #tpu.pipeline_mode<synchronous>, transform_indices = @transform_2, window_bounds = array<i64: 1, 512>}, {pipeline_mode = #tpu.pipeline_mode<synchronous>, transform_indices = @transform_3, window_bounds = array<i64: 512, 128>}, {pipeline_mode = #tpu.pipeline_mode<synchronous>, transform_indices = @transform_4, window_bounds = array<i64: 1, 128>}, {transform_indices = @transform_5, window_bounds = array<i64: 8, 128>}]} {
    %c0 = arith.constant 0 : index
    %c0_0 = arith.constant 0 : index
    %0 = vector.load %arg1[%c0, %c0_0] : memref<8x256xf32, #tpu.memory_space<vmem>>, vector<8x256xf32>
    %c0_1 = arith.constant 0 : index
    %c0_2 = arith.constant 0 : index
    %1 = vector.load %arg2[%c0_1, %c0_2] : memref<256x512xf32, #tpu.memory_space<vmem>>, vector<256x512xf32>
    %cst = arith.constant dense<0.000000e+00> : vector<8x512xf32>
    %2 = tpu.matmul %0, %1, %cst {dimension_numbers = #tpu.dot_dimension_numbers<[1], [0], [0], [1], [0, 0, 1, 1], [], []>} : vector<8x256xf32>, vector<256x512xf32>, vector<8x512xf32> -> vector<8x512xf32>
    %c0_3 = arith.constant 0 : index
    %c0_4 = arith.constant 0 : index
    %3 = vector.load %arg3[%c0_3, %c0_4] : memref<1x512xf32, #tpu.memory_space<vmem>>, vector<1x512xf32>
    %4 = vector.broadcast %3 : vector<1x512xf32> to vector<8x512xf32>
    %5 = arith.addf %2, %4 : vector<8x512xf32>
    %cst_5 = arith.constant 0.000000e+00 : f32
    %6 = vector.broadcast %cst_5 : f32 to vector<8x512xf32>
    %7 = arith.maximumf %5, %6 : vector<8x512xf32>
    %c0_6 = arith.constant 0 : index
    %c0_7 = arith.constant 0 : index
    %8 = vector.load %arg4[%c0_6, %c0_7] : memref<512x128xf32, #tpu.memory_space<vmem>>, vector<512x128xf32>
    %cst_8 = arith.constant dense<0.000000e+00> : vector<8x128xf32>
    %9 = tpu.matmul %7, %8, %cst_8 {dimension_numbers = #tpu.dot_dimension_numbers<[1], [0], [0], [1], [0, 0, 1, 1], [], []>} : vector<8x512xf32>, vector<512x128xf32>, vector<8x128xf32> -> vector<8x128xf32>
    %c0_9 = arith.constant 0 : index
    %c0_10 = arith.constant 0 : index
    %10 = vector.load %arg5[%c0_9, %c0_10] : memref<1x128xf32, #tpu.memory_space<vmem>>, vector<1x128xf32>
    %11 = vector.broadcast %10 : vector<1x128xf32> to vector<8x128xf32>
    %12 = arith.addf %9, %11 : vector<8x128xf32>
    %c0_11 = arith.constant 0 : index
    %c0_12 = arith.constant 0 : index
    %13 = vector.load %arg6[%c0_11, %c0_12] : memref<8x128xf32, #tpu.memory_space<vmem>>, vector<8x128xf32>
    tpu.vector_store %arg6[%c0_11, %c0_12], %12 {strides = array<i32>} : memref<8x128xf32, #tpu.memory_space<vmem>>, vector<8x128xf32>,
    return
  }
  func.func @transform_0(%arg0: i32) -> (i32, i32) {
    %c0_i32 = arith.constant 0 : i32
    %c0_i32_0 = arith.constant 0 : i32
    return %arg0, %c0_i32 : i32, i32
  }
  func.func @transform_1(%arg0: i32) -> (i32, i32) {
    %c0_i32 = arith.constant 0 : i32
    %c0_i32_0 = arith.constant 0 : i32
    %c0_i32_1 = arith.constant 0 : i32
    return %c0_i32, %c0_i32_0 : i32, i32
  }
  func.func @transform_2(%arg0: i32) -> (i32, i32) {
    %c0_i32 = arith.constant 0 : i32
    %c0_i32_0 = arith.constant 0 : i32
    %c0_i32_1 = arith.constant 0 : i32
    return %c0_i32, %c0_i32_0 : i32, i32
  }
  func.func @transform_3(%arg0: i32) -> (i32, i32) {
    %c0_i32 = arith.constant 0 : i32
    %c0_i32_0 = arith.constant 0 : i32
    %c0_i32_1 = arith.constant 0 : i32
    return %c0_i32, %c0_i32_0 : i32, i32
  }
  func.func @transform_4(%arg0: i32) -> (i32, i32) {
    %c0_i32 = arith.constant 0 : i32
    %c0_i32_0 = arith.constant 0 : i32
    %c0_i32_1 = arith.constant 0 : i32
    return %c0_i32, %c0_i32_0 : i32, i32
  }
  func.func @transform_5(%arg0: i32) -> (i32, i32) {
    %c0_i32 = arith.constant 0 : i32
    %c0_i32_0 = arith.constant 0 : i32
    return %arg0, %c0_i32 : i32, i32
  }
}

</mosaic_0001>

<bundles_post_ra>
// kernel: tpu_custom_call.1
= control target key start
LH: loop header
LB: loop body
LE: loop exit
PB: predicated region body
PF: predicated region fallthrough
CT: control target
= control target key end

     0   :  { %10 = vsyncpa [#allocation3], 0  ;;  %s1101_s0 = inlined_call_operand.hbm [shape: f32[2,256], index: 0, kind: input, shape index: {}]   ;;  %s1102_s1 = inlined_call_operand.hbm [shape: f32[256,512], index: 1, kind: input, shape index: {}]   ;;  %s1103_s2 = inlined_call_operand.vmem [shape: f32[1,512], index: 2, kind: input, shape index: {}]   ;;  %s1104_s3 = inlined_call_operand.hbm [shape: f32[512,128], index: 3, kind: input, shape index: {}]   ;;  %s1105_s4 = inlined_call_operand.vmem [shape: f32[1,128], index: 4, kind: input, shape index: {}]   ;;  %s1106_s5 = inlined_call_operand.hbm [shape: f32[2,128], index: 5, kind: output, shape index: {}]  }
   0x1   :  { %11 = vsyncpa [#allocation6], 0 }
   0x2   :  { %12 = vsyncpa [#allocation4], 0 }
   0x3   :  { %17 = vsyncadd [#allocation3], 192  ;;  %s989_s18 = smov [#allocation5]   ;;  %s895_s22 = scalar_lea.hbm %s1102_s1, 16384 }
   0x4   :  { %s30_s19 = sshll.u32 %s989_s18, 4  ;;  %p896_p0 = scmp.ne.s32.totalorder %s1102_s1, %s895_s22  ;;  %s31_s19 = int_to_ptr.vmem [resolvable:$true] %s30_s19 }
   0x5   :  { %p899_p1 = scmp.lt.u32.totalorder %s895_s22, %s1102_s1 }
   0x7   :  { %p901_p2 = pnand %p899_p1, %p896_p0 }
   0x9   :  { %904 = shalt.err (!%p901_p2)
}
   0xa   :  { %s905_s27 = scalar_lea.vmem %s31_s19, 16384  ;;  %p910_p4 = scmp.lt.s32.totalorder %s31_s19, %s31_s19 }
   0xb   :  { %p906_p3 = scmp.ne.s32.totalorder %s31_s19, %s905_s27  ;;  %p911_p5 = scmp.lt.s32.totalorder %s905_s27, %s905_s27 }
   0xd   :  { %p912_p6 = por %p911_p5, %p910_p4 }
   0xf   :  { %p913_p7 = pnand %p912_p6, %p906_p3 }
  0x11   :  { %916 = shalt.err (!%p913_p7)
}
  0x12   :  { %s990_s28 = smov 512   ;;  %s991_s29 = smov 32  }
  0x13   :  { %36 = dma.hbm_to_vmem [thread:$0]  %s1102_s1, 16384, %s31_s19, [#allocation6], %s990_s28, %s990_s28, %s991_s29  }
  0x14   :  { %s992_s7 = smov [#allocation2]   ;;  %s917_s11 = scalar_lea.hbm %s1101_s0, 64 }
  0x15   :  { %s18_s8 = sshll.u32 %s992_s7, 4  ;;  %p918_p8 = scmp.ne.s32.totalorder %s1101_s0, %s917_s11  ;;  %s19_s8 = int_to_ptr.vmem [resolvable:$true] %s18_s8 }
  0x16   :  { %p921_p9 = scmp.lt.u32.totalorder %s917_s11, %s1101_s0 }
  0x18   :  { %p923_p10 = pnand %p921_p9, %p918_p8 }
  0x1a   :  { %926 = shalt.err (!%p923_p10)
}
  0x1b   :  { %s927_s16 = scalar_lea.vmem %s19_s8, 64  ;;  %s931_s1 = scalar_lea.vmem %s19_s8, 256 }
  0x1c   :  { %p928_p11 = scmp.ne.s32.totalorder %s19_s8, %s927_s16  ;;  %p932_p12 = scmp.lt.s32.totalorder %s19_s8, %s19_s8 }
  0x1d   :  { %p933_p13 = scmp.lt.s32.totalorder %s931_s1, %s927_s16 }
  0x1f   :  { %p934_p0 = por %p933_p13, %p932_p12 }
  0x21   :  { %p935_p1 = pnand %p934_p0, %p928_p11 }
  0x23   :  { %938 = shalt.err (!%p935_p1)
}
  0x24   :  { %s993_s17 = smov 64   ;;  %s994_s18 = smov 4  }
  0x25   :  { %24 = dma.hbm_to_vmem [thread:$0]  %s1101_s0, 64, %s19_s8, [#allocation3], %s993_s17, %s993_s17, %s994_s18  }
  0x26   :  { %s995_s21 = smov [#allocation7]   ;;  %s939_s25 = scalar_lea.hbm %s1104_s3, 8192 }
  0x27   :  { %s44_s22 = sshll.u32 %s995_s21, 4  ;;  %p940_p2 = scmp.ne.s32.totalorder %s1104_s3, %s939_s25  ;;  %s45_s22 = int_to_ptr.vmem [resolvable:$true] %s44_s22 }
  0x28   :  { %p943_p3 = scmp.lt.u32.totalorder %s939_s25, %s1104_s3 }
  0x2a   :  { %p945_p4 = pnand %p943_p3, %p940_p2 }
  0x2c   :  { %948 = shalt.err (!%p945_p4)
}
  0x2d   :  { %s949_s6 = scalar_lea.vmem %s45_s22, 8192  ;;  %p954_p6 = scmp.lt.s32.totalorder %s45_s22, %s45_s22 }
  0x2e   :  { %p950_p5 = scmp.ne.s32.totalorder %s45_s22, %s949_s6  ;;  %p955_p7 = scmp.lt.s32.totalorder %s949_s6, %s949_s6 }
  0x30   :  { %p956_p8 = por %p955_p7, %p954_p6 }
  0x32   :  { %p957_p9 = pnand %p956_p8, %p950_p5 }
  0x34   :  { %960 = shalt.err (!%p957_p9)
}
  0x35   :  { %s996_s0 = smov 128   ;;  %s997_s7 = smov 8  }
  0x36   :  { %50 = dma.hbm_to_vmem [thread:$0]  %s1104_s3, 8192, %s45_s22, [#allocation6], %s996_s0, %s996_s0, %s997_s7  }
  0x37   :  { %983 = dma.done.wait [#allocation3], 256  }
  0x38   :  { %984 = vsyncadd [#allocation3], 4294967040 }
  0x39   :  { %985 = dma.done.wait [#allocation6], 24576  }
  0x3a   :  { %986 = vsyncadd [#allocation6], 4294942720  ;;  %v67_v0 = vld [vmem:[#allocation5 + $0x8] sm:$0xff]  ;;  %v69_v2 = vld [vmem:[#allocation5 + $0x18] sm:$0xff] }
  0x3b   :  { %v71_v1 = vld [vmem:[#allocation5 + $0x28] sm:$0xff]  ;;  %v73_v4 = vld [vmem:[#allocation5 + $0x38] sm:$0xff]  ;;  %v66_v5 = vld [vmem:[#allocation5] sm:$0xff] }
  0x3c   :  { %v687_v3 = vpack.c.bf16 %v71_v1, %v67_v0  ;;  %v70_v6 = vld [vmem:[#allocation5 + $0x20] sm:$0xff]  ;;  %v751_v7 = vpack.c.bf16 %v73_v4, %v69_v2  ;;  %v68_v9 = vld [vmem:[#allocation5 + $0x10] sm:$0xff]  ;;  %v75_v11 = vld [vmem:[#allocation5 + $0x48] sm:$0xff] }
  0x3d   :  { %v689_v8 = vpack.c.bf16 %v70_v6, %v66_v5  ;;  %v72_v10 = vld [vmem:[#allocation5 + $0x30] sm:$0xff]  ;;  %v79_v13 = vld [vmem:[#allocation5 + $0x68] sm:$0xff]  ;;  %v77_v14 = vld [vmem:[#allocation5 + $0x58] sm:$0xff] }
  0x3e   :  { %688 = vmatprep.subr.bf16.mxu0 %v687_v3  ;;  %v753_v12 = vpack.c.bf16 %v72_v10, %v68_v9  ;;  %v81_v15 = vld [vmem:[#allocation5 + $0x78] sm:$0xff]  ;;  %752 = vmatprep.subr.bf16.mxu1 %v751_v7  ;;  %v691_v16 = vpack.c.bf16 %v79_v13, %v75_v11  ;;  %v74_v18 = vld [vmem:[#allocation5 + $0x40] sm:$0xff]  ;;  %v76_v20 = vld [vmem:[#allocation5 + $0x50] sm:$0xff] }
  0x3f   :  { %690 = vmatpush1.bf16.msra.mxu0 %v689_v8  ;;  %v755_v17 = vpack.c.bf16 %v81_v15, %v77_v14  ;;  %v78_v19 = vld [vmem:[#allocation5 + $0x60] sm:$0xff]  ;;  %v80_v22 = vld [vmem:[#allocation5 + $0x70] sm:$0xff]  ;;  %v83_v23 = vld [vmem:[#allocation5 + $0x88] sm:$0xff] }
  0x40   :  { %754 = vmatpush1.bf16.msra.mxu1 %v753_v12  ;;  %v693_v21 = vpack.c.bf16 %v78_v19, %v74_v18  ;;  %v87_v24 = vld [vmem:[#allocation5 + $0xa8] sm:$0xff]  ;;  %692 = vmatprep.subr.bf16.mxu0 %v691_v16  ;;  %v757_v25 = vpack.c.bf16 %v80_v22, %v76_v20  ;;  %v85_v27 = vld [vmem:[#allocation5 + $0x98] sm:$0xff]  ;;  %v82_v29 = vld [vmem:[#allocation5 + $0x80] sm:$0xff] }
  0x41   :  { %756 = vmatprep.subr.bf16.mxu1 %v755_v17  ;;  %v695_v26 = vpack.c.bf16 %v87_v24, %v83_v23  ;;  %v89_v28 = vld [vmem:[#allocation5 + $0xb8] sm:$0xff]  ;;  %v86_v31 = vld [vmem:[#allocation5 + $0xa0] sm:$0xff]  ;;  %v84_v32 = vld [vmem:[#allocation5 + $0x90] sm:$0xff] }
  0x42   :  { %v759_v30 = vpack.c.bf16 %v89_v28, %v85_v27  ;;  %v88_v33 = vld [vmem:[#allocation5 + $0xb0] sm:$0xff]  ;;  %v697_v34 = vpack.c.bf16 %v86_v31, %v82_v29  ;;  %v91_v35 = vld [vmem:[#allocation5 + $0xc8] sm:$0xff]  ;;  %v93_v37 = vld [vmem:[#allocation5 + $0xd8] sm:$0xff] }
  0x43   :  { %694 = vmatpush1.bf16.msra.mxu0 %v693_v21  ;;  %v95_v36 = vld [vmem:[#allocation5 + $0xe8] sm:$0xff]  ;;  %v761_v38 = vpack.c.bf16 %v88_v33, %v84_v32  ;;  %v97_v40 = vld [vmem:[#allocation5 + $0xf8] sm:$0xff]  ;;  %v90_v41 = vld [vmem:[#allocation5 + $0xc0] sm:$0xff] }
  0x44   :  { %758 = vmatpush1.bf16.msra.mxu1 %v757_v25  ;;  %696 = vmatprep.subr.bf16.mxu0 %v695_v26  ;;  %v699_v39 = vpack.c.bf16 %v95_v36, %v91_v35  ;;  %v94_v42 = vld [vmem:[#allocation5 + $0xe0] sm:$0xff]  ;;  %v763_v43 = vpack.c.bf16 %v97_v40, %v93_v37  ;;  %v92_v44 = vld [vmem:[#allocation5 + $0xd0] sm:$0xff]  ;;  %v99_v46 = vld [vmem:[#allocation5 + $0x108] sm:$0xff] }
  0x45   :  { %760 = vmatprep.subr.bf16.mxu1 %v759_v30  ;;  %v96_v45 = vld [vmem:[#allocation5 + $0xf0] sm:$0xff]  ;;  %v103_v47 = vld [vmem:[#allocation5 + $0x128] sm:$0xff]  ;;  %v101_v48 = vld [vmem:[#allocation5 + $0x118] sm:$0xff]  ;;  %v701_v50 = vpack.c.bf16 %v94_v42, %v90_v41 }
  0x46   :  { %v105_v49 = vld [vmem:[#allocation5 + $0x138] sm:$0xff]  ;;  %v765_v51 = vpack.c.bf16 %v96_v45, %v92_v44  ;;  %v703_v52 = vpack.c.bf16 %v103_v47, %v99_v46  ;;  %v98_v53 = vld [vmem:[#allocation5 + $0x100] sm:$0xff]  ;;  %v100_v55 = vld [vmem:[#allocation5 + $0x110] sm:$0xff] }
  0x47   :  { %698 = vmatpush1.bf16.msra.mxu0 %v697_v34  ;;  %v102_v54 = vld [vmem:[#allocation5 + $0x120] sm:$0xff]  ;;  %v767_v56 = vpack.c.bf16 %v105_v49, %v101_v48  ;;  %v104_v57 = vld [vmem:[#allocation5 + $0x130] sm:$0xff]  ;;  %v107_v58 = vld [vmem:[#allocation5 + $0x148] sm:$0xff] }
  0x48   :  { %762 = vmatpush1.bf16.msra.mxu1 %v761_v38  ;;  %700 = vmatprep.subr.bf16.mxu0 %v699_v39  ;;  %v111_v59 = vld [vmem:[#allocation5 + $0x168] sm:$0xff]  ;;  %v109_v60 = vld [vmem:[#allocation5 + $0x158] sm:$0xff]  ;;  %v705_v62 = vpack.c.bf16 %v102_v54, %v98_v53  ;;  %v769_v63 = vpack.c.bf16 %v104_v57, %v100_v55  ;;  %v106_v1 = vld [vmem:[#allocation5 + $0x140] sm:$0xff] }
  0x49   :  { %764 = vmatprep.subr.bf16.mxu1 %v763_v43  ;;  %v113_v61 = vld [vmem:[#allocation5 + $0x178] sm:$0xff]  ;;  %v707_v0 = vpack.c.bf16 %v111_v59, %v107_v58  ;;  %v110_v2 = vld [vmem:[#allocation5 + $0x160] sm:$0xff]  ;;  %v108_v3 = vld [vmem:[#allocation5 + $0x150] sm:$0xff] }
  0x4a   :  { %v771_v4 = vpack.c.bf16 %v113_v61, %v109_v60  ;;  %v112_v5 = vld [vmem:[#allocation5 + $0x170] sm:$0xff]  ;;  %v115_v6 = vld [vmem:[#allocation5 + $0x188] sm:$0xff]  ;;  %v117_v8 = vld [vmem:[#allocation5 + $0x198] sm:$0xff]  ;;  %v709_v10 = vpack.c.bf16 %v110_v2, %v106_v1 }
  0x4b   :  { %702 = vmatpush1.bf16.msra.mxu0 %v701_v50  ;;  %v119_v7 = vld [vmem:[#allocation5 + $0x1a8] sm:$0xff]  ;;  %v121_v9 = vld [vmem:[#allocation5 + $0x1b8] sm:$0xff]  ;;  %v773_v11 = vpack.c.bf16 %v112_v5, %v108_v3  ;;  %v114_v13 = vld [vmem:[#allocation5 + $0x180] sm:$0xff] }
  0x4c   :  { %766 = vmatpush1.bf16.msra.mxu1 %v765_v51  ;;  %704 = vmatprep.subr.bf16.mxu0 %v703_v52  ;;  %v711_v12 = vpack.c.bf16 %v119_v7, %v115_v6  ;;  %v118_v14 = vld [vmem:[#allocation5 + $0x1a0] sm:$0xff]  ;;  %v116_v15 = vld [vmem:[#allocation5 + $0x190] sm:$0xff]  ;;  %v775_v16 = vpack.c.bf16 %v121_v9, %v117_v8  ;;  %v123_v18 = vld [vmem:[#allocation5 + $0x1c8] sm:$0xff] }
  0x4d   :  { %768 = vmatprep.subr.bf16.mxu1 %v767_v56  ;;  %v120_v17 = vld [vmem:[#allocation5 + $0x1b0] sm:$0xff]  ;;  %v127_v19 = vld [vmem:[#allocation5 + $0x1e8] sm:$0xff]  ;;  %v125_v20 = vld [vmem:[#allocation5 + $0x1d8] sm:$0xff]  ;;  %v713_v22 = vpack.c.bf16 %v118_v14, %v114_v13  ;;  %v196_v56 = vlaneseq }
  0x4e   :  { %v129_v21 = vld [vmem:[#allocation5 + $0x1f8] sm:$0xff]  ;;  %v777_v23 = vpack.c.bf16 %v120_v17, %v116_v15  ;;  %v715_v24 = vpack.c.bf16 %v127_v19, %v123_v18  ;;  %v122_v25 = vld [vmem:[#allocation5 + $0x1c0] sm:$0xff]  ;;  %v124_v27 = vld [vmem:[#allocation5 + $0x1d0] sm:$0xff] }
  0x4f   :  { %706 = vmatpush1.bf16.msra.mxu0 %v705_v62  ;;  %v126_v26 = vld [vmem:[#allocation5 + $0x1e0] sm:$0xff]  ;;  %v779_v28 = vpack.c.bf16 %v129_v21, %v125_v20  ;;  %v128_v29 = vld [vmem:[#allocation5 + $0x1f0] sm:$0xff]  ;;  %v131_v30 = vld [vmem:[#allocation5 + $0x208] sm:$0xff]  ;;  %v1067_v5 = vshrl.u32 %v196_v56, 7 }
  0x50   :  { %770 = vmatpush1.bf16.msra.mxu1 %v769_v63  ;;  %708 = vmatprep.subr.bf16.mxu0 %v707_v0  ;;  %v135_v31 = vld [vmem:[#allocation5 + $0x228] sm:$0xff]  ;;  %v133_v32 = vld [vmem:[#allocation5 + $0x218] sm:$0xff]  ;;  %v717_v34 = vpack.c.bf16 %v126_v26, %v122_v25  ;;  %v781_v35 = vpack.c.bf16 %v128_v29, %v124_v27  ;;  %v130_v37 = vld [vmem:[#allocation5 + $0x200] sm:$0xff] }
  0x51   :  { %772 = vmatprep.subr.bf16.mxu1 %v771_v4  ;;  %v137_v33 = vld [vmem:[#allocation5 + $0x238] sm:$0xff]  ;;  %v719_v36 = vpack.c.bf16 %v135_v31, %v131_v30  ;;  %v134_v38 = vld [vmem:[#allocation5 + $0x220] sm:$0xff]  ;;  %v132_v39 = vld [vmem:[#allocation5 + $0x210] sm:$0xff] }
  0x52   :  { %v783_v40 = vpack.c.bf16 %v137_v33, %v133_v32  ;;  %v136_v41 = vld [vmem:[#allocation5 + $0x230] sm:$0xff]  ;;  %v139_v42 = vld [vmem:[#allocation5 + $0x248] sm:$0xff]  ;;  %v141_v44 = vld [vmem:[#allocation5 + $0x258] sm:$0xff]  ;;  %v721_v46 = vpack.c.bf16 %v134_v38, %v130_v37 }
  0x53   :  { %710 = vmatpush1.bf16.msra.mxu0 %v709_v10  ;;  %v143_v43 = vld [vmem:[#allocation5 + $0x268] sm:$0xff]  ;;  %v145_v45 = vld [vmem:[#allocation5 + $0x278] sm:$0xff]  ;;  %v785_v47 = vpack.c.bf16 %v136_v41, %v132_v39  ;;  %v138_v49 = vld [vmem:[#allocation5 + $0x240] sm:$0xff] }
  0x54   :  { %774 = vmatpush1.bf16.msra.mxu1 %v773_v11  ;;  %712 = vmatprep.subr.bf16.mxu0 %v711_v12  ;;  %v723_v48 = vpack.c.bf16 %v143_v43, %v139_v42  ;;  %v142_v50 = vld [vmem:[#allocation5 + $0x260] sm:$0xff]  ;;  %v140_v51 = vld [vmem:[#allocation5 + $0x250] sm:$0xff]  ;;  %v787_v52 = vpack.c.bf16 %v145_v45, %v141_v44  ;;  %v147_v54 = vld [vmem:[#allocation5 + $0x288] sm:$0xff] }
  0x55   :  { %776 = vmatprep.subr.bf16.mxu1 %v775_v16  ;;  %v144_v53 = vld [vmem:[#allocation5 + $0x270] sm:$0xff]  ;;  %v151_v55 = vld [vmem:[#allocation5 + $0x2a8] sm:$0xff]  ;;  %v149_v57 = vld [vmem:[#allocation5 + $0x298] sm:$0xff]  ;;  %v725_v59 = vpack.c.bf16 %v142_v50, %v138_v49 }
  0x56   :  { %v153_v58 = vld [vmem:[#allocation5 + $0x2b8] sm:$0xff]  ;;  %v789_v60 = vpack.c.bf16 %v144_v53, %v140_v51  ;;  %v727_v61 = vpack.c.bf16 %v151_v55, %v147_v54  ;;  %v146_v62 = vld [vmem:[#allocation5 + $0x280] sm:$0xff]  ;;  %v148_v0 = vld [vmem:[#allocation5 + $0x290] sm:$0xff] }
  0x57   :  { %714 = vmatpush1.bf16.msra.mxu0 %v713_v22  ;;  %v150_v63 = vld [vmem:[#allocation5 + $0x2a0] sm:$0xff]  ;;  %v791_v1 = vpack.c.bf16 %v153_v58, %v149_v57  ;;  %v152_v2 = vld [vmem:[#allocation5 + $0x2b0] sm:$0xff]  ;;  %v155_v3 = vld [vmem:[#allocation5 + $0x2c8] sm:$0xff] }
  0x58   :  { %778 = vmatpush1.bf16.msra.mxu1 %v777_v23  ;;  %716 = vmatprep.subr.bf16.mxu0 %v715_v24  ;;  %v159_v4 = vld [vmem:[#allocation5 + $0x2e8] sm:$0xff]  ;;  %v157_v6 = vld [vmem:[#allocation5 + $0x2d8] sm:$0xff]  ;;  %v729_v8 = vpack.c.bf16 %v150_v63, %v146_v62  ;;  %v154_v9 = vld [vmem:[#allocation5 + $0x2c0] sm:$0xff]  ;;  %v793_v12 = vpack.c.bf16 %v152_v2, %v148_v0 }
  0x59   :  { %780 = vmatprep.subr.bf16.mxu1 %v779_v28  ;;  %v161_v7 = vld [vmem:[#allocation5 + $0x2f8] sm:$0xff]  ;;  %v158_v10 = vld [vmem:[#allocation5 + $0x2e0] sm:$0xff]  ;;  %v156_v11 = vld [vmem:[#allocation5 + $0x2d0] sm:$0xff]  ;;  %v731_v13 = vpack.c.bf16 %v159_v4, %v155_v3 }
  0x5a   :  { %v160_v14 = vld [vmem:[#allocation5 + $0x2f0] sm:$0xff]  ;;  %v163_v15 = vld [vmem:[#allocation5 + $0x308] sm:$0xff]  ;;  %v795_v17 = vpack.c.bf16 %v161_v7, %v157_v6  ;;  %v165_v18 = vld [vmem:[#allocation5 + $0x318] sm:$0xff]  ;;  %v733_v20 = vpack.c.bf16 %v158_v10, %v154_v9 }
  0x5b   :  { %718 = vmatpush1.bf16.msra.mxu0 %v717_v34  ;;  %v167_v16 = vld [vmem:[#allocation5 + $0x328] sm:$0xff]  ;;  %v169_v19 = vld [vmem:[#allocation5 + $0x338] sm:$0xff]  ;;  %v1069_v21 = vld.sshfl [vmem:[#allocation2] sm:$0xff pattern:$0x76325410]  ;;  %v797_v23 = vpack.c.bf16 %v160_v14, %v156_v11 }
  0x5c   :  { %782 = vmatpush1.bf16.msra.mxu1 %v781_v35  ;;  %720 = vmatprep.subr.bf16.mxu0 %v719_v36  ;;  %v1071_v22 = vld.sshfl [vmem:[#allocation2 + $0x8] sm:$0xff pattern:$0x76325410]  ;;  %v735_v24 = vpack.c.bf16 %v167_v16, %v163_v15  ;;  %v162_v25 = vld [vmem:[#allocation5 + $0x300] sm:$0xff]  ;;  %v164_v27 = vld [vmem:[#allocation5 + $0x310] sm:$0xff]  ;;  %v799_v28 = vpack.c.bf16 %v169_v19, %v165_v18 }
  0x5d   :  { %784 = vmatprep.subr.bf16.mxu1 %v783_v40  ;;  %v166_v26 = vld [vmem:[#allocation5 + $0x320] sm:$0xff]  ;;  %v168_v29 = vld [vmem:[#allocation5 + $0x330] sm:$0xff]  ;;  %v171_v30 = vld [vmem:[#allocation5 + $0x348] sm:$0xff]  ;;  %v237_v35 = vcombine.high %v1069_v21, %v1071_v22  ;;  %v236_v18 = vcombine.low %v1069_v21, %v1071_v22 }
  0x5e   :  { %v175_v31 = vld [vmem:[#allocation5 + $0x368] sm:$0xff]  ;;  %v173_v32 = vld [vmem:[#allocation5 + $0x358] sm:$0xff]  ;;  %v737_v34 = vpack.c.bf16 %v166_v26, %v162_v25  ;;  %v801_v36 = vpack.c.bf16 %v168_v29, %v164_v27  ;;  %v170_v38 = vld [vmem:[#allocation5 + $0x340] sm:$0xff] }
  0x5f   :  { %722 = vmatpush1.bf16.msra.mxu0 %v721_v46  ;;  %v177_v33 = vld [vmem:[#allocation5 + $0x378] sm:$0xff]  ;;  %v739_v37 = vpack.c.bf16 %v175_v31, %v171_v30  ;;  %v174_v39 = vld [vmem:[#allocation5 + $0x360] sm:$0xff]  ;;  %v172_v40 = vld [vmem:[#allocation5 + $0x350] sm:$0xff]  ;;  %304 = vmatprep.mubr.f32.mxu0 %v237_v35 }
  0x60   :  { %786 = vmatpush1.bf16.msra.mxu1 %v785_v47  ;;  %724 = vmatprep.subr.bf16.mxu0 %v723_v48  ;;  %v803_v41 = vpack.c.bf16 %v177_v33, %v173_v32  ;;  %v176_v42 = vld [vmem:[#allocation5 + $0x370] sm:$0xff]  ;;  %v179_v43 = vld [vmem:[#allocation5 + $0x388] sm:$0xff]  ;;  %v181_v45 = vld [vmem:[#allocation5 + $0x398] sm:$0xff]  ;;  %v741_v47 = vpack.c.bf16 %v174_v39, %v170_v38 }
  0x61   :  { %788 = vmatprep.subr.bf16.mxu1 %v787_v52  ;;  %v183_v44 = vld [vmem:[#allocation5 + $0x3a8] sm:$0xff]  ;;  %v185_v46 = vld [vmem:[#allocation5 + $0x3b8] sm:$0xff]  ;;  %375 = vmatprep.mubr.f32.mxu1 %v237_v35  ;;  %v805_v48 = vpack.c.bf16 %v176_v42, %v172_v40  ;;  %v178_v50 = vld [vmem:[#allocation5 + $0x380] sm:$0xff] }
  0x62   :  { %v743_v49 = vpack.c.bf16 %v183_v44, %v179_v43  ;;  %v182_v51 = vld [vmem:[#allocation5 + $0x3a0] sm:$0xff]  ;;  %v180_v52 = vld [vmem:[#allocation5 + $0x390] sm:$0xff]  ;;  %v807_v53 = vpack.c.bf16 %v185_v46, %v181_v45  ;;  %v187_v55 = vld [vmem:[#allocation5 + $0x3c8] sm:$0xff] }
  0x63   :  { %726 = vmatpush1.bf16.msra.mxu0 %v725_v59  ;;  %v184_v54 = vld [vmem:[#allocation5 + $0x3b0] sm:$0xff]  ;;  %v191_v56 = vld [vmem:[#allocation5 + $0x3e8] sm:$0xff]  ;;  %v189_v57 = vld [vmem:[#allocation5 + $0x3d8] sm:$0xff]  ;;  %v745_v59 = vpack.c.bf16 %v182_v51, %v178_v50 }
  0x64   :  { %790 = vmatpush1.bf16.msra.mxu1 %v789_v60  ;;  %728 = vmatprep.subr.bf16.mxu0 %v727_v61  ;;  %v193_v58 = vld [vmem:[#allocation5 + $0x3f8] sm:$0xff]  ;;  %v809_v60 = vpack.c.bf16 %v184_v54, %v180_v52  ;;  %v747_v61 = vpack.c.bf16 %v191_v56, %v187_v55  ;;  %v186_v62 = vld [vmem:[#allocation5 + $0x3c0] sm:$0xff]  ;;  %v188_v0 = vld [vmem:[#allocation5 + $0x3d0] sm:$0xff] }
  0x65   :  { %792 = vmatprep.subr.bf16.mxu1 %v791_v1  ;;  %v190_v63 = vld [vmem:[#allocation5 + $0x3e0] sm:$0xff]  ;;  %v811_v1 = vpack.c.bf16 %v193_v58, %v189_v57  ;;  %v192_v2 = vld [vmem:[#allocation5 + $0x3f0] sm:$0xff]  ;;  %v403_v4 = vld [vmem:[#allocation7 + $0x88] sm:$0xff] }
  0x66   :  { %v402_v3 = vld [vmem:[#allocation7 + $0x80] sm:$0xff]  ;;  %v435_v7 = vld [vmem:[#allocation7 + $0x188] sm:$0xff]  ;;  %v813_v9 = vpack.c.bf16 %v192_v2, %v188_v0  ;;  %v404_v16 = vld [vmem:[#allocation7 + $0x90] sm:$0xff] }
  0x67   :  { %730 = vmatpush1.bf16.msra.mxu0 %v729_v8  ;;  %v434_v6 = vld [vmem:[#allocation7 + $0x180] sm:$0xff]  ;;  %v749_v8 = vpack.c.bf16 %v190_v63, %v186_v62  ;;  %v815_v10 = vpack.c.bf16 %v403_v4, %v402_v3  ;;  %v419_v15 = vld [vmem:[#allocation7 + $0x108] sm:$0xff]  ;;  %v436_v19 = vld [vmem:[#allocation7 + $0x190] sm:$0xff] }
  0x68   :  { %794 = vmatpush1.bf16.msra.mxu1 %v793_v12  ;;  %732 = vmatprep.subr.bf16.mxu0 %v731_v13  ;;  %v386_v11 = vld [vmem:[#allocation7] sm:$0xff]  ;;  %v387_v12 = vld [vmem:[#allocation7 + $0x8] sm:$0xff]  ;;  %v847_v14 = vpack.c.bf16 %v435_v7, %v434_v6  ;;  %v388_v26 = vld [vmem:[#allocation7 + $0x10] sm:$0xff] }
  0x69   :  { %796 = vmatprep.subr.bf16.mxu1 %v795_v17  ;;  %v418_v13 = vld [vmem:[#allocation7 + $0x100] sm:$0xff]  ;;  %v405_v17 = vld [vmem:[#allocation7 + $0x98] sm:$0xff]  ;;  %v407_v32 = vld [vmem:[#allocation7 + $0xa8] sm:$0xff] }
  0x6a   :  { %v819_v25 = vpack.c.bf16 %v405_v17, %v404_v16  ;;  %v389_v27 = vld [vmem:[#allocation7 + $0x18] sm:$0xff]  ;;  %v406_v31 = vld [vmem:[#allocation7 + $0xa0] sm:$0xff]  ;;  %v423_v40 = vld [vmem:[#allocation7 + $0x128] sm:$0xff] }
  0x6b   :  { %734 = vmatpush1.bf16.msra.mxu0 %v733_v20  ;;  %v437_v20 = vld [vmem:[#allocation7 + $0x198] sm:$0xff]  ;;  %v438_v33 = vld [vmem:[#allocation7 + $0x1a0] sm:$0xff]  ;;  %v821_v21 = vpack.c.bf16 %v389_v27, %v388_v26  ;;  %v823_v35 = vpack.c.bf16 %v407_v32, %v406_v31  ;;  %v440_v43 = vld [vmem:[#allocation7 + $0x1b0] sm:$0xff] }
  0x6c   :  { %798 = vmatpush1.bf16.msra.mxu1 %v797_v23  ;;  %736 = vmatprep.subr.bf16.mxu0 %v735_v24  ;;  %v817_v23 = vpack.c.bf16 %v387_v12, %v386_v11  ;;  %v849_v24 = vpack.c.bf16 %v419_v15, %v418_v13  ;;  %v851_v29 = vpack.c.bf16 %v437_v20, %v436_v19  ;;  %v421_v30 = vld [vmem:[#allocation7 + $0x118] sm:$0xff]  ;;  %v422_v38 = vld [vmem:[#allocation7 + $0x120] sm:$0xff]  ;;  %v424_v50 = vld [vmem:[#allocation7 + $0x130] sm:$0xff] }
  0x6d   :  { %800 = vmatprep.subr.bf16.mxu1 %v799_v28  ;;  %v420_v28 = vld [vmem:[#allocation7 + $0x110] sm:$0xff]  ;;  %v409_v42 = vld [vmem:[#allocation7 + $0xb8] sm:$0xff]  ;;  %v857_v46 = vpack.c.bf16 %v423_v40, %v422_v38  ;;  %v411_v54 = vld [vmem:[#allocation7 + $0xc8] sm:$0xff]  ;;  %v198_v40 = vsub.s32 0, %v1067_v5 }
  0x6e   :  { %v853_v22 = vpack.c.bf16 %v421_v30, %v420_v28  ;;  %v441_v44 = vld [vmem:[#allocation7 + $0x1b8] sm:$0xff]  ;;  %v442_v55 = vld [vmem:[#allocation7 + $0x1c0] sm:$0xff]  ;;  %v443_v56 = vld [vmem:[#allocation7 + $0x1c8] sm:$0xff] }
  0x6f   :  { %738 = vmatpush1.bf16.msra.mxu0 %v737_v34  ;;  %v439_v34 = vld [vmem:[#allocation7 + $0x1a8] sm:$0xff]  ;;  %v859_v51 = vpack.c.bf16 %v441_v44, %v440_v43  ;;  %v425_v52 = vld [vmem:[#allocation7 + $0x138] sm:$0xff]  ;;  %v426_v62 = vld [vmem:[#allocation7 + $0x140] sm:$0xff]  ;;  %v863_v63 = vpack.c.bf16 %v443_v56, %v442_v55  ;;  %v202_v43 = vsub.s32 1, %v1067_v5  ;;  %v210_v44 = vsub.s32 3, %v1067_v5 }
  0x70   :  { %802 = vmatpush1.bf16.msra.mxu1 %v801_v36  ;;  %740 = vmatprep.subr.bf16.mxu0 %v739_v37  ;;  %v390_v36 = vld [vmem:[#allocation7 + $0x20] sm:$0xff]  ;;  %v391_v37 = vld [vmem:[#allocation7 + $0x28] sm:$0xff]  ;;  %v855_v39 = vpack.c.bf16 %v439_v34, %v438_v33  ;;  %v861_v58 = vpack.c.bf16 %v425_v52, %v424_v50  ;;  %v413_v2 = vld [vmem:[#allocation7 + $0xd8] sm:$0xff] }
  0x71   :  { %804 = vmatprep.subr.bf16.mxu1 %v803_v41  ;;  %v408_v41 = vld [vmem:[#allocation7 + $0xb0] sm:$0xff]  ;;  %v825_v45 = vpack.c.bf16 %v391_v37, %v390_v36  ;;  %v427_v0 = vld [vmem:[#allocation7 + $0x148] sm:$0xff]  ;;  %v445_v4 = vld [vmem:[#allocation7 + $0x1d8] sm:$0xff] }
  0x72   :  { %v444_v3 = vld [vmem:[#allocation7 + $0x1d0] sm:$0xff]  ;;  %v865_v7 = vpack.c.bf16 %v427_v0, %v426_v62  ;;  %v429_v13 = vld [vmem:[#allocation7 + $0x158] sm:$0xff]  ;;  %v415_v15 = vld [vmem:[#allocation7 + $0xe8] sm:$0xff] }
  0x73   :  { %742 = vmatpush1.bf16.msra.mxu0 %v741_v47  ;;  %v827_v47 = vpack.c.bf16 %v409_v42, %v408_v41  ;;  %v428_v11 = vld [vmem:[#allocation7 + $0x150] sm:$0xff]  ;;  %v867_v12 = vpack.c.bf16 %v445_v4, %v444_v3  ;;  %v446_v16 = vld [vmem:[#allocation7 + $0x1e0] sm:$0xff]  ;;  %v447_v17 = vld [vmem:[#allocation7 + $0x1e8] sm:$0xff]  ;;  %v206_v42 = vsub.s32 2, %v1067_v5 }
  0x74   :  { %806 = vmatpush1.bf16.msra.mxu1 %v805_v48  ;;  %744 = vmatprep.subr.bf16.mxu0 %v743_v49  ;;  %v392_v48 = vld [vmem:[#allocation7 + $0x30] sm:$0xff]  ;;  %v393_v49 = vld [vmem:[#allocation7 + $0x38] sm:$0xff]  ;;  %v869_v19 = vpack.c.bf16 %v429_v13, %v428_v11  ;;  %v430_v26 = vld [vmem:[#allocation7 + $0x160] sm:$0xff] }
  0x75   :  { %808 = vmatprep.subr.bf16.mxu1 %v807_v53  ;;  %v410_v53 = vld [vmem:[#allocation7 + $0xc0] sm:$0xff]  ;;  %v829_v57 = vpack.c.bf16 %v393_v49, %v392_v48  ;;  %v431_v28 = vld [vmem:[#allocation7 + $0x168] sm:$0xff]  ;;  %v416_v30 = vld [vmem:[#allocation7 + $0xf0] sm:$0xff] }
  0x76   :  { %v417_v31 = vld [vmem:[#allocation7 + $0xf8] sm:$0xff]  ;;  %v448_v32 = vld [vmem:[#allocation7 + $0x1f0] sm:$0xff] }
  0x77   :  { %746 = vmatpush1.bf16.msra.mxu0 %v745_v59  ;;  %v831_v59 = vpack.c.bf16 %v411_v54, %v410_v53  ;;  %v843_v33 = vpack.c.bf16 %v417_v31, %v416_v30  ;;  %v449_v34 = vld [vmem:[#allocation7 + $0x1f8] sm:$0xff]  ;;  %v432_v37 = vld [vmem:[#allocation7 + $0x170] sm:$0xff] }
  0x78   :  { %810 = vmatpush1.bf16.msra.mxu1 %v809_v60  ;;  %748 = vmatprep.subr.bf16.mxu0 %v747_v61  ;;  %v394_v60 = vld [vmem:[#allocation7 + $0x40] sm:$0xff]  ;;  %v395_v61 = vld [vmem:[#allocation7 + $0x48] sm:$0xff]  ;;  %v433_v38 = vld [vmem:[#allocation7 + $0x178] sm:$0xff] }
  0x79   :  { %812 = vmatprep.subr.bf16.mxu1 %v811_v1  ;;  %v412_v1 = vld [vmem:[#allocation7 + $0xd0] sm:$0xff]  ;;  %v833_v6 = vpack.c.bf16 %v395_v61, %v394_v60 }
  0x7a   :  { %v194_v41 = vld [vmem:[%s1103_s2] sm:$0xf] }
  0x7b   :  { %750 = vmatpush1.bf16.msra.mxu0 %v749_v8  ;;  %v835_v8 = vpack.c.bf16 %v413_v2, %v412_v1  ;;  %v211_v48 = vrot.slane %v194_v41, %v210_v44  ;;  %v616_v62 = vld [vmem:[%s1105_s4] ss:$0 sm:$0xff] }
  0x7c   :  { %814 = vmatpush1.bf16.msra.mxu1 %v813_v9  ;;  %816 = vmatprep.subr.bf16.mxu0 %v815_v10  ;;  %v396_v9 = vld [vmem:[#allocation7 + $0x50] sm:$0xff]  ;;  %v397_v10 = vld [vmem:[#allocation7 + $0x58] sm:$0xff] }
  0x7d   :  { %848 = vmatprep.subr.bf16.mxu1 %v847_v14  ;;  %v414_v14 = vld [vmem:[#allocation7 + $0xe0] sm:$0xff] }
  0x7e   :  { %305 = vmatmul.mubr.f32.vlgmr.msra.gmra.mrb[0].mxu0 %v236_v18  ;;  %v839_v20 = vpack.c.bf16 %v415_v15, %v414_v14 }
  0x7f   :  { %376 = vmatmul.mubr.f32.vlgmr.msra.gmra.mrb[0].mxu1 %v236_v18  ;;  %818 = vmatpush3.bf16.msra.mxu0 %v817_v23  ;;  %v837_v18 = vpack.c.bf16 %v397_v10, %v396_v9  ;;  %v871_v23 = vpack.c.bf16 %v447_v17, %v446_v16 }
  0x80   :  { %850 = vmatpush3.bf16.msra.mxu1 %v849_v24  ;;  %820 = vmatprep.subr.bf16.mxu0 %v819_v25  ;;  %v398_v24 = vld [vmem:[#allocation7 + $0x60] sm:$0xff]  ;;  %v399_v25 = vld [vmem:[#allocation7 + $0x68] sm:$0xff] }
  0x81   :  { %852 = vmatprep.subr.bf16.mxu1 %v851_v29  ;;  %v841_v27 = vpack.c.bf16 %v399_v25, %v398_v24  ;;  %v873_v29 = vpack.c.bf16 %v431_v28, %v430_v26 }
  0x83   :  { %822 = vmatpush3.bf16.msra.mxu0 %v821_v21  ;;  %v400_v21 = vld [vmem:[#allocation7 + $0x70] sm:$0xff] }
  0x84   :  { %854 = vmatpush3.bf16.msra.mxu1 %v853_v22  ;;  %824 = vmatprep.subr.bf16.mxu0 %v823_v35  ;;  %v401_v22 = vld [vmem:[#allocation7 + $0x78] sm:$0xff]  ;;  %v875_v35 = vpack.c.bf16 %v449_v34, %v448_v32 }
  0x85   :  { %856 = vmatprep.subr.bf16.mxu1 %v855_v39  ;;  %v845_v36 = vpack.c.bf16 %v401_v22, %v400_v21  ;;  %v877_v39 = vpack.c.bf16 %v433_v38, %v432_v37 }
  0x87   :  { %826 = vmatpush3.bf16.msra.mxu0 %v825_v45  ;;  %v199_v45 = vrot.slane %v194_v41, %v198_v40 }
  0x88   :  { %858 = vmatpush3.bf16.msra.mxu1 %v857_v46  ;;  %828 = vmatprep.subr.bf16.mxu0 %v827_v47  ;;  %v207_v46 = vrot.slane %v194_v41, %v206_v42  ;;  %v203_v47 = vrot.slane %v194_v41, %v202_v43 }
  0x89   :  { %860 = vmatprep.subr.bf16.mxu1 %v859_v51 }
  0x8b   :  { %830 = vmatpush3.bf16.msra.mxu0 %v829_v57 }
  0x8c   :  { %862 = vmatpush3.bf16.msra.mxu1 %v861_v58  ;;  %832 = vmatprep.subr.bf16.mxu0 %v831_v59 }
  0x8d   :  { %864 = vmatprep.subr.bf16.mxu1 %v863_v63 }
  0x8f   :  { %834 = vmatpush3.bf16.msra.mxu0 %v833_v6 }
  0x90   :  { %866 = vmatpush3.bf16.msra.mxu1 %v865_v7  ;;  %836 = vmatprep.subr.bf16.mxu0 %v835_v8 }
  0x91   :  { %868 = vmatprep.subr.bf16.mxu1 %v867_v12 }
  0x93   :  { %838 = vmatpush3.bf16.msra.mxu0 %v837_v18 }
  0x94   :  { %870 = vmatpush3.bf16.msra.mxu1 %v869_v19  ;;  %840 = vmatprep.subr.bf16.mxu0 %v839_v20 }
  0x95   :  { %872 = vmatprep.subr.bf16.mxu1 %v871_v23 }
  0x97   :  { %842 = vmatpush3.bf16.msra.mxu0 %v841_v27 }
  0x98   :  { %874 = vmatpush3.bf16.msra.mxu1 %v873_v29  ;;  %844 = vmatprep.subr.bf16.mxu0 %v843_v33 }
  0x99   :  { %876 = vmatprep.subr.bf16.mxu1 %v875_v35 }
  0x9b   :  { %846 = vmatpush3.bf16.msra.mxu0 %v845_v36 }
  0x9c   :  { %878 = vmatpush3.bf16.msra.mxu1 %v877_v39 }
 0x151   :  { %v306_v49 = vpop.f32.mrb[0].mxu0 }
 0x152   :  { %v307_v50 = vadd.f32 %v306_v49, %v199_v45  ;;  %v377_v51 = vpop.f32.mrb[0].mxu1  ;;  %v308_v52 = vpop.f32.mrb[1].mxu0 }
 0x153   :  { %v378_v53 = vadd.f32 %v377_v51, %v207_v46  ;;  %v309_v54 = vadd.f32 %v308_v52, %v203_v47  ;;  %v379_v55 = vpop.f32.mrb[1].mxu1 }
 0x154   :  { %v380_v56 = vadd.f32 %v379_v55, %v211_v48  ;;  %v382_v59 = vmax.f32 %v307_v50, 0.0 }
 0x155   :  { %v384_v57 = vmax.f32 %v378_v53, 0.0  ;;  %v383_v58 = vmax.f32 %v309_v54, 0.0 }
 0x156   :  { %v385_v60 = vmax.f32 %v380_v56, 0.0 }
 0x157   :  { %521 = vmatprep.mubr.f32.mxu0 %v383_v58 }
 0x158   :  { %591 = vmatprep.mubr.f32.mxu1 %v385_v60  ;;  %522 = vmatmul.mubr.f32.vlgmr.msra.gmra.mrb[2].mxu0 %v382_v59 }
 0x159   :  { %592 = vmatmul.mubr.f32.vlgmr.msra.gmra.mrb[2].mxu1 %v384_v57 }
 0x22b   :  { %v649_v5 = vpop.f32.mrb[2].mxu0 }
 0x22c   :  { %v684_v61 = vpop.f32.mrb[2].mxu1  ;;  %v650_v63 = vpop.f32.mrb[3].mxu0 }
 0x22d   :  { %v651_v0 = vadd.f32 %v650_v63, %v649_v5  ;;  %v685_v1 = vpop.f32.mrb[3].mxu1 }
 0x22e   :  { %v686_v2 = vadd.f32 %v685_v1, %v684_v61 }
 0x22f   :  { %v524_v3 = vadd.f32 %v651_v0, %v616_v62 }
 0x231   :  { %v594_v4 = vadd.f32 %v686_v2, %v524_v3 }
 0x233   :  { %597 = vst [vmem:[#allocation8] sm:$0xff] %v594_v4 }
 0x234   :  { %602 = vsyncadd [#allocation4], 96  ;;  %s998_s12 = smov [#allocation8]  }
 0x235   :  { %s603_s13 = sshll.u32 %s998_s12, 4  ;;  %s604_s13 = int_to_ptr.vmem [resolvable:$true] %s603_s13 }
 0x236   :  { %s961_s14 = scalar_lea.vmem %s604_s13, 32  ;;  %s965_s15 = scalar_lea.vmem %s604_s13, 128 }
 0x237   :  { %p962_p10 = scmp.ne.s32.totalorder %s604_s13, %s961_s14  ;;  %p966_p11 = scmp.lt.s32.totalorder %s604_s13, %s604_s13 }
 0x238   :  { %p967_p12 = scmp.lt.s32.totalorder %s965_s15, %s961_s14 }
 0x23a   :  { %p968_p13 = por %p967_p12, %p966_p11 }
 0x23c   :  { %p969_p0 = pnand %p968_p13, %p962_p10 }
 0x23e   :  { %972 = shalt.err (!%p969_p0)
}
 0x23f   :  { %s973_s1 = scalar_lea.hbm %s1106_s5, 32 }
 0x240   :  { %p974_p1 = scmp.ne.s32.totalorder %s1106_s5, %s973_s1  ;;  %p977_p2 = scmp.lt.u32.totalorder %s973_s1, %s1106_s5 }
 0x242   :  { %p979_p3 = pnand %p977_p2, %p974_p1 }
 0x244   :  { %982 = shalt.err (!%p979_p3)
}
 0x245   :  { %s999_s21 = smov 2  }
 0x246   :  { %609 = dma.vmem_to_hbm [thread:$0]  %s604_s13, 32, %s1106_s5, [#allocation4], %s991_s29, %s991_s29, %s999_s21  }
 0x247   :  { %987 = dma.done.wait [#allocation4], 128  }
 0x248   :  { %988 = vsyncadd [#allocation4], 4294967168 }
 0x249   :  { %613 = vsyncpa [#allocation3], 1 }
 0x24a   :  { %614 = vsyncpa [#allocation6], 1 }
 0x24b   :  { %615 = vsyncpa [#allocation4], 1 }

</bundles_post_ra>
